<compile_context>
chip_gen: v5e
topology: v5e:2x2
jax: 0.10.0
libtpu: 0.0.40
codegen_flags: <defaults>
</compile_context>

<pallas_src>
import functools
import numpy as np
import jax
import jax.numpy as jnp
from jax.experimental import pallas as pl
from jax.experimental.pallas import tpu as pltpu


def _choquet_kernel(x_ref, w_ref, thr_ref, o_ref):
    """Hot path: lane-dense fused weighted reduce + threshold activation.

    x_ref  : (F, TB) VMEM tile, batch on the lane axis
    w_ref  : (F, 1)  VMEM constrained weights, pre-scaled by 0.5 / sum(w)
    thr_ref: (1,)    SMEM scalar, 0.5 * threshold
    o_ref  : (1, TB) VMEM lane-dense output tile
    """
    x = x_ref[...]
    w = w_ref[...]
    if x.dtype != w.dtype:              # avoid a no-op cast when x is already f32
        x = x.astype(w.dtype)
    # score/2 = sum_f x[f, :] * (0.5 * w_f / sum(w))  -> (1, TB), lane-dense.
    score_half = jnp.sum(x * w, axis=0, keepdims=True)
    z = score_half - thr_ref[0]         # 0.5 * (score - threshold)
    # sigmoid(score - thr) = 0.5 * tanh(0.5 * (score - thr)) + 0.5
    # (single EUP transcendental, no divide).
    o_ref[...] = (0.5 * jnp.tanh(z) + 0.5).astype(o_ref.dtype)


def _pick_block(B: int, block_b: int) -> int:
    """Static (trace-time) tile choice along the batch (lane) axis.

    - Tiny batch: one full-extent block (block == array dim, so the 128-lane
      multiple requirement does not apply).
    - Large batch: tile is a multiple of 128 lanes and the grid has >= 4 steps
      (>= 2 per v7x TensorCore) so each core's auto-pipeline has something to
      overlap; capped by block_b to bound VMEM.
    """
    if B < 512:
        return B
    bb = (B // 4) // 128 * 128          # >= 4 grid steps, 128-lane multiple
    return max(128, min(bb, block_b))


@functools.partial(jax.jit, static_argnames=("block_b",))
def choquet_integral_constrained(x, w_fused, threshold, block_b=65536):
    """Wrapper. x: (B, F) or (B, S, F); w_fused: (1, F) constrained weights; threshold: (1,)."""
    # Batch-on-lanes layout.  For 3-D inputs the seq-0 slice already copies, so
    # fusing the transpose into it is free (one HBM pass producing (F, B)).
    if x.ndim == 3:
        x_t = jnp.transpose(x[:, 0, :])      # (F, B)
    else:
        x_t = jnp.transpose(x)               # (F, B); one extra pass for 2-D inputs
    F, B = x_t.shape

    # Hoist all loop-invariant scalar work out of the kernel (full precision,
    # tiny XLA ops): fold 0.5/sum(w) into the weights and halve the threshold.
    w_half = (0.5 * w_fused / jnp.sum(w_fused)).astype(jnp.float32).reshape(F, 1)
    thr_half = (0.5 * threshold).astype(jnp.float32)

    bb = _pick_block(B, block_b)
    grid = (pl.cdiv(B, bb),)
    out = pl.pallas_call(
        _choquet_kernel,
        out_shape=jax.ShapeDtypeStruct((1, B), jnp.float32),
        grid=grid,
        in_specs=[
            # Candidate hardware sweep: pipeline_mode=pl.Buffered(3) on this spec
            # once the kernel is confirmed DMA-bound on a bundle dump.
            pl.BlockSpec((F, bb), lambda i: (0, i)),
            pl.BlockSpec((F, 1), lambda i: (0, 0)),
            pl.BlockSpec(memory_space=pltpu.MemorySpace.SMEM),
        ],
        out_specs=pl.BlockSpec((1, bb), lambda i: (0, i)),
        compiler_params=pltpu.CompilerParams(
            dimension_semantics=("parallel",),
            # Lane-dense tiles are tiny (~4 MiB/buffer at bb=65536 incl. sublane
            # padding); 32 MiB is generous headroom and safe on all generations
            # (well under v7x's 64 MiB physical VMEM).
            vmem_limit_bytes=32 * 1024 * 1024,
        ),
    )(x_t, w_half, thr_half)
    return out.reshape(B, 1)


def build_constrained_weights(w_crit_raw, w_int_raw, num_criteria, min_w=1e-7):
    """Parameter glue (plain JAX): apply the >0 and interaction constraints,
    and fuse the two weight vectors into a single (1, C + P) vector."""
    # LinearGreaterThanZero.w(): weights < 0 -> min_w
    w_crit = jnp.where(w_crit_raw < 0.0, jnp.float32(min_w), w_crit_raw)  # (1, C)
    # LinearInteraction.w(): w_ij = max(w_ij, -w_i, -w_j) for i < j
    ii, jj = np.triu_indices(num_criteria, k=1)
    lower_bound = jnp.maximum(-w_crit[0, ii], -w_crit[0, jj])             # (P,)
    w_int = jnp.maximum(w_int_raw, lower_bound[None, :])                  # (1, P)
    return jnp.concatenate([w_crit, w_int], axis=-1)                      # (1, C+P)


def reference_forward(x, w_fused, threshold):
    """Pure-JAX reference matching the PyTorch module's math exactly."""
    if x.ndim == 3:
        x = x[:, 0, :]
    score = (x @ w_fused[0]) / jnp.sum(w_fused)
    return jax.nn.sigmoid(score[:, None] - threshold[0])


if __name__ == "__main__":
    num_criteria = 4                                      # C
    num_pairs = num_criteria * (num_criteria - 1) // 2    # P = 6
    F = num_criteria + num_pairs                          # 10
    B, S = 600, 3          # small demo; exercises 5 grid steps incl. a partial lane tile

    key = jax.random.PRNGKey(0)
    k_x, k_wc, k_wi = jax.random.split(key, 3)

    # Deterministic parameter init mirroring the module's reset_parameters():
    #   criteria weights ~ U(0.1, 1.0), interaction weights ~ N(0, 0.1)
    w_crit_raw = jax.random.uniform(k_wc, (1, num_criteria), jnp.float32,
                                    minval=0.1, maxval=1.0)
    w_int_raw = 0.1 * jax.random.normal(k_wi, (1, num_pairs), jnp.float32)
    threshold = jnp.array([0.5], dtype=jnp.float32)

    # Example 3-D input (B, S, F); the forward takes x[:, 0, :].
    x = jax.random.uniform(k_x, (B, S, F), jnp.float32)

    w_fused = build_constrained_weights(w_crit_raw, w_int_raw, num_criteria)

    out = choquet_integral_constrained(x, w_fused, threshold)
    out = jax.block_until_ready(out)

    ref = reference_forward(x, w_fused, threshold)
    assert out.shape == (B, 1)
    # Slightly loosened tolerance: the kernel uses the EUP tanh form of sigmoid,
    # which can differ from XLA's stable sigmoid by a few ulps.
    np.testing.assert_allclose(np.asarray(out), np.asarray(ref),
                               rtol=1e-4, atol=1e-4)
    print("KERNEL_OK")
</pallas_src>

<mosaic_0001>
module attributes {stable_mosaic.version = 11 : i64} {
  func.func @_choquet_kernel(%arg0: i32, %arg1: memref<10x128xf32, #tpu.memory_space<vmem>>, %arg2: memref<10x1xf32, #tpu.memory_space<vmem>>, %arg3: memref<1xf32, #tpu.memory_space<smem>>, %arg4: memref<1x128xf32, #tpu.memory_space<vmem>>) attributes {dimension_semantics = [#tpu.dimension_semantics<parallel>], iteration_bounds = array<i64: 5>, scalar_prefetch = 0 : i64, scratch_operands = 0 : i64, tpu.core_type = #tpu.core_type<tc>, window_params = [{transform_indices = @transform_0, window_bounds = array<i64: 10, 128>}, {pipeline_mode = #tpu.pipeline_mode<synchronous>, transform_indices = @transform_1, window_bounds = array<i64: 10, 1>}, {transform_indices = @transform_2, window_bounds = array<i64: 1>}, {transform_indices = @transform_3, window_bounds = array<i64: 1, 128>}]} {
    %c0 = arith.constant 0 : index
    %c0_0 = arith.constant 0 : index
    %0 = vector.load %arg1[%c0, %c0_0] : memref<10x128xf32, #tpu.memory_space<vmem>>, vector<10x128xf32>
    %c0_1 = arith.constant 0 : index
    %c0_2 = arith.constant 0 : index
    %1 = vector.load %arg2[%c0_1, %c0_2] : memref<10x1xf32, #tpu.memory_space<vmem>>, vector<10x1xf32>
    %2 = vector.broadcast %1 : vector<10x1xf32> to vector<10x128xf32>
    %3 = arith.mulf %0, %2 : vector<10x128xf32>
    %cst = arith.constant dense<0.000000e+00> : vector<128xf32>
    %4 = vector.multi_reduction <add>, %3, %cst [0] : vector<10x128xf32> to vector<128xf32>
    %5 = vector.shape_cast %4 : vector<128xf32> to vector<1x128xf32>
    %c0_3 = arith.constant 0 : index
    %6 = memref.load %arg3[%c0_3] : memref<1xf32, #tpu.memory_space<smem>>
    %7 = vector.broadcast %6 : f32 to vector<1x128xf32>
    %8 = arith.subf %5, %7 : vector<1x128xf32>
    %9 = math.tanh %8 : vector<1x128xf32>
    %cst_4 = arith.constant 5.000000e-01 : f32
    %10 = vector.broadcast %cst_4 : f32 to vector<1x128xf32>
    %11 = arith.mulf %10, %9 : vector<1x128xf32>
    %cst_5 = arith.constant 5.000000e-01 : f32
    %12 = vector.broadcast %cst_5 : f32 to vector<1x128xf32>
    %13 = arith.addf %11, %12 : vector<1x128xf32>
    %c0_6 = arith.constant 0 : index
    %c0_7 = arith.constant 0 : index
    %14 = vector.load %arg4[%c0_6, %c0_7] : memref<1x128xf32, #tpu.memory_space<vmem>>, vector<1x128xf32>
    tpu.vector_store %arg4[%c0_6, %c0_7], %13 {strides = array<i32>} : memref<1x128xf32, #tpu.memory_space<vmem>>, vector<1x128xf32>,
    return
  }
  func.func @transform_0(%arg0: i32) -> (i32, i32) {
    %c0_i32 = arith.constant 0 : i32
    %c0_i32_0 = arith.constant 0 : i32
    return %c0_i32, %arg0 : i32, i32
  }
  func.func @transform_1(%arg0: i32) -> (i32, i32) {
    %c0_i32 = arith.constant 0 : i32
    %c0_i32_0 = arith.constant 0 : i32
    %c0_i32_1 = arith.constant 0 : i32
    return %c0_i32, %c0_i32_0 : i32, i32
  }
  func.func @transform_2(%arg0: i32) -> i32 {
    %c0_i32 = arith.constant 0 : i32
    %c0_i32_0 = arith.constant 0 : i32
    return %c0_i32 : i32
  }
  func.func @transform_3(%arg0: i32) -> (i32, i32) {
    %c0_i32 = arith.constant 0 : i32
    %c0_i32_0 = arith.constant 0 : i32
    return %c0_i32, %arg0 : i32, i32
  }
}

</mosaic_0001>

<bundles_post_ra>
// kernel: choquet_integral_constrained.1
= control target key start
LH: loop header
LB: loop body
LE: loop exit
PB: predicated region body
PF: predicated region fallthrough
CT: control target
= control target key end

     0   :  { %s552_s0 = inlined_call_operand.vmem [shape: f32[10,600], index: 0, kind: input, shape index: {}]   ;;  %s553_s1 = inlined_call_operand.vmem [shape: f32[10,1], index: 1, kind: input, shape index: {}]   ;;  %s554_s2 = inlined_call_operand.<no memory space> [shape: f32[1], index: 2, kind: input, shape index: {}]   ;;  %s555_s3 = inlined_call_operand.hbm [shape: f32[1,600], index: 3, kind: output, shape index: {}]  }
   0x1   :  { %8 = sst [smem:[#allocation2]] %s554_s2 }
   0x2   :  { %9 = vsyncpa [#allocation5], 0 }
   0x3   :  { %11 = vsyncpa [#allocation5 + $0x1], 0  ;;  %s454_s14 = smov 0   ;;  %s456_s15 = smov 0  }
   0x4   :  { %s458_s16 = smov 0   ;;  %s460_s17 = smov 0  }
   0x5 LB: > { %s313_s2 = sadd.s32 4294967295, %s428_s17   ;;  %s314_s18 = sadd.s32 4294967294, %s428_s17   ;;  %s428_s17 = sphi %s460_s17, %s561_s17   ;;  %s424_s16 = sphi %s458_s16, %s560_s16   ;;  %s420_s15 = sphi %s456_s15, %s559_s15   ;;  %s416_s14 = sphi %s454_s14, %s558_s14  }
   0x6   : > { %s477_s19 = sadd.s32 1, %s428_s17   ;;  %s24_s20 = sadd.s32 1, %s424_s16 }
   0x7   : > { %s21_s21 = ssub.s32 %s428_s17, %s477_s19  ;;  %p31_p0 = scmp.ne.s32.totalorder %s424_s16, %s420_s15 }
   0x8   : > { %p22_p1 = scmp.eq.s32.totalorder %s21_s21, 0  ;;  %p32_p2 = scmp.eq.s32.totalorder %s428_s17, 0 }
   0x9   : > { %p103_p3 = scmp.eq.s32.totalorder %s313_s2, 4  ;;  %p108_p4 = scmp.ne.s32.totalorder %s420_s15, %s416_s14 }
   0xa   : > { %s490_s22 = scalar_select %p22_p1, %s424_s16, %s24_s20  }
   0xb   : > { %p33_p5 = por %p32_p2, %p31_p0  ;;  %p492_p6 = por %p103_p3, %p31_p0 }
   0xc   : > { %p109_p7 = scmp.eq.s32.totalorder %s314_s18, 4  ;;  %p316_p9 = scmp.ge.s32.totalorder %s428_s17, 5 }
   0xe   : > { %p496_p8 = por %p109_p7, %p108_p4  ;;  %131 = sbr.rel (%p316_p9) target bundleno = 25 (0x19), region = 24 }
  0x13   : > { %134 = sbr.rel (!%p33_p5) target bundleno = 25 (0x19), region = 28  ;;  %s136_s25 = sand.u32 (%p33_p5), 1, %s424_s16  }
  0x14   : > { %s318_s26 = sshll.u32 (%p33_p5), %s428_s17, 3  ;;  %s317_s27 = sshll.u32 (%p33_p5), %s136_s25, 4 }
  0x15   : > { %s140_s30 = scalar_lea.vmem (%p33_p5), %s552_s0, %s318_s26  ;;  %s138_s4 = scalar_lea.vmem (%p33_p5), [#allocation3], %s317_s27 }
  0x16   : > { %v171_v0 = vld [vmem:[%s140_s30] sm:$0xff] (%p33_p5)  ;;  %v173_v1 = vld [vmem:[%s140_s30 + $0x28] sm:$0xff] (%p33_p5) }
  0x17   : > { %172 = vst [vmem:[%s138_s4] sm:$0xff] (%p33_p5), %v171_v0 }
  0x18   : > { %174 = vst [vmem:[%s138_s4 + $0x8] sm:$0xff] %v173_v1 }
  0x19 PF: > { %p319_p10 = scmp.ge.s32.totalorder %s428_s17, 1  ;;  %p179_p11 = scmp.lt.s32.totalorder %s428_s17, 6 }
  0x1b   : > { %p180_p12 = pnand %p319_p10, %p179_p11 }
  0x1c   : > { %s515_s9 = sand.u32 (!%p180_p12), 1, %s420_s15   ;;  %s233_s12 = sld [smem:[#allocation2]] (!%p180_p12) }
  0x1d   : > { %183 = sbr.rel (%p180_p12) target bundleno = 191 (0xbf), region = 66  ;;  %s320_s10 = sshll.u32 (!%p180_p12), %s515_s9, 4 }
  0x1e   : > { %s188_s11 = scalar_lea.vmem (!%p180_p12), [#allocation3], %s320_s10  ;;  %s249_s20 = scalar_lea.hbm (!%p180_p12), %s555_s3, %s313_s2 }
  0x1f   : > { %s207_s21 = scalar_lea.vmem (!%p180_p12), [#allocation4], %s515_s9  ;;  %s253_s26 = sshll.u32 (!%p180_p12), %s249_s20, 4  ;;  %s254_s26 = int_to_ptr.hbm [resolvable:$true] %s253_s26 }
  0x20   : > { %s251_s25 = sshll.u32 (!%p180_p12), %s207_s21, 4  ;;  %s241_s27 = scalar_lea.sflag (!%p180_p12), [#allocation5], %s515_s9  ;;  %s252_s25 = int_to_ptr.vmem [resolvable:$true] %s251_s25 }
  0x21   : > { %s380_s28 = sshra.s32 (!%p180_p12), %s254_s26, 4  ;;  %s386_s2 = scalar_lea.hbm (!%p180_p12), %s555_s3, 5  ;;  %s381_s28 = int_to_ptr.hbm [resolvable:$true] %s380_s28 }
  0x22   : > { %v211_v2 = vld [vmem:[%s553_s1 + $0x8] sm:$0x3]  ;;  %v430_v3 = vmov 0   ;;  %v210_v4 = vld [vmem:[%s553_s1] sm:$0xff]  ;;  %vm224_vm0 = vcmask 1041408   ;;  %v234_v18 = vstv %s233_s12  ;;  %s382_s29 = scalar_lea.hbm %s381_s28, 1  ;;  %p387_p2 = scmp.lt.s32.totalorder %s381_s28, %s555_s3 }
  0x23   : > { %363 = vset.pattern.permute.xlu0 %v430_v3  ;;  %v209_v6 = vld [vmem:[%s188_s11 + $0x8] sm:$0x3]  ;;  %v208_v8 = vld [vmem:[%s188_s11] sm:$0xff]  ;;  %p383_p13 = scmp.ne.s32.totalorder %s381_s28, %s382_s29  ;;  %p388_p3 = scmp.lt.s32.totalorder %s386_s2, %s382_s29 }
  0x24   : > { %219 = vperm.xlu0 %363, %v211_v2  }
  0x25   : > { %p384_p0 = pnand %p383_p13, %p492_p6  ;;  %p389_p4 = por %p388_p3, %p387_p2 }
  0x27   : > { %p385_p1 = pneg %p384_p0 }
  0x29   : > { %p390_p5 = pnand %p389_p4, %p385_p1 }
  0x2c   : > { %214 = vperm.xlu0 %363, %v210_v4  }
  0x96   : > { %v220_v5 = vpop.permute.xlu0 %219 }
  0x97   : > { %v223_v7 = vmul.f32 %v220_v5, %v209_v6 }
  0x99   : > { %v225_v11 = vsel %vm224_vm0, %v223_v7, 0.0 }
  0x9e   : > { %v215_v9 = vpop.permute.xlu0 %214 }
  0x9f   : > { %v222_v10 = vmul.f32 %v215_v9, %v208_v8 }
  0xa1   : > { %v226_v12 = vadd.f32 %v225_v11, %v222_v10 }
  0xa3   : > { %v227_v13 = vrot.slane %v226_v12, 4 }
  0xa5   : > { %v228_v14 = vadd.f32 %v227_v13, %v226_v12 }
  0xa7   : > { %v229_v15 = vrot.slane %v228_v14, 2 }
  0xa9   : > { %v230_v16 = vadd.f32 %v229_v15, %v228_v14 }
  0xab   : > { %v231_v17 = vrot.slane %v230_v16, 1 }
  0xad   : > { %v232_v19 = vadd.f32 %v231_v17, %v230_v16 }
  0xaf   : > { %v235_v20 = vsub.f32 %v232_v19, %v234_v18 }
  0xb1   : > { %364 = vtanh.f32 %v235_v20 }
  0xb7   : > { %v365_v21 = vpop.eup %364 }
  0xb8   : > { %v237_v22 = vmul.f32 0.5, %v365_v21 }
  0xba   : > { %v238_v23 = vadd.f32 0.5, %v237_v22 }
  0xbc   : > { %239 = vst [vmem:[%s207_s21] sm:$0x1] %v238_v23 }
  0xbd   : > { %393 = shalt.err (!%p390_p5)
}
  0xbe   : > { %323 = dma.vmem_to_hbm [thread:$0]  (%p492_p6), %s252_s25, 16, %s254_s26, %s241_s27  }
  0xbf PF: > { %p329_p7 = scmp.ge.s32.totalorder %s428_s17, 2  ;;  %s265_s7 = sand.u32 1, %s416_s14  }
  0xc0   : > { %s266_s8 = scalar_lea.sflag [#allocation5], %s265_s7 }
  0xc1   : > { %p326_p9 = pnand %p329_p7, %p496_p8 }
  0xc3   : > { %p327_p10 = pneg %p326_p9 }
  0xc5   : > { %411 = dma.done.wait (%p327_p10), %s266_s8, 16  }
  0xc6   : > { %413 = vsyncadd (%p327_p10), %s266_s8, 4294967280  ;;  %p14_p11 = scmp.ge.s32.totalorder %s477_s19, 7   ;;  %s558_s14 = smov %s420_s15 }
  0xc7   : > { %s559_s15 = smov %s424_s16  ;;  %s560_s16 = smov %s490_s22 }
  0xc8   : > { %s561_s17 = smov %s477_s19  ;;  %16 = sbr.rel (!%p14_p11) target bundleno = 5 (0x5), region = 110 }
  0xcd   :  { %271 = vsyncpa [#allocation5], 1 }
  0xce   :  { %273 = vsyncpa [#allocation5 + $0x1], 1 }

</bundles_post_ra>
